<compile_context>
chip_gen: v5e
topology: v5e:2x2
jax: 0.10.0
libtpu: 0.0.40
codegen_flags: <defaults>
</compile_context>

<pallas_src>
import jax
import jax.numpy as jnp
from jax.experimental import pallas as pl
from jax.experimental.pallas import tpu as pltpu

EMB = 32            # embedding_dim
_MOVIE_TILE = 2048  # max movie tile on the lane axis (multiple of 128)
_PAIR_TILE = 512    # max pairwise batch tile (keeps >=2 grid steps for big B)


def _round_up(x, m):
    return ((x + m - 1) // m) * m


def _default_act_dtype():
    """bf16 elementwise only on chips with a bf16 VALU (v6e / v7x)."""
    try:
        kind = jax.devices()[0].device_kind.lower()
    except Exception:
        return jnp.float32
    if ("v6" in kind) or ("v7" in kind):
        return jnp.bfloat16
    return jnp.float32


# ----------------------------------------------------------------------------
# Kernels (transposed [features, batch] layout; batch / movies on the lane axis)
# ----------------------------------------------------------------------------

def _dqn_pair_kernel(u_ref, m_ref,
                     w1_ref, b1_ref, w2_ref, b2_ref,
                     v1_ref, c1_ref, v2_ref, c2_ref, v3_ref, c3_ref,
                     out_ref):
    """Per-pair Q for one batch tile of matched (user, movie) pairs."""
    bf16 = jnp.bfloat16
    # state_net: Linear(32,64) -> ReLU -> Linear(64,32) -> ReLU
    h = jnp.dot(w1_ref[...], u_ref[...], preferred_element_type=jnp.float32)
    h = jnp.maximum(h.astype(b1_ref.dtype) + b1_ref[...], 0.0)           # (64, TB)
    s = jnp.dot(w2_ref[...], h.astype(bf16), preferred_element_type=jnp.float32)
    s = jnp.maximum(s.astype(b2_ref.dtype) + b2_ref[...], 0.0)           # (32, TB)

    # concat([state, movie]) along the feature (sublane) axis.  Row 32 is a
    # bf16 sublane-tile boundary, so this concat is relayout-free.
    x = jnp.concatenate([s.astype(bf16), m_ref[...]], axis=0)            # (64, TB)

    # value_net: Linear(64,64) -> ReLU -> Linear(64,32) -> ReLU -> Linear(32,1)
    z = jnp.dot(v1_ref[...], x, preferred_element_type=jnp.float32)
    z = jnp.maximum(z.astype(c1_ref.dtype) + c1_ref[...], 0.0)           # (64, TB)
    z = jnp.dot(v2_ref[...], z.astype(bf16), preferred_element_type=jnp.float32)
    z = jnp.maximum(z.astype(c2_ref.dtype) + c2_ref[...], 0.0)           # (32, TB)
    q = jnp.dot(v3_ref[...], z.astype(bf16), preferred_element_type=jnp.float32)  # (8, TB)
    out_ref[...] = q[0:1, :] + c3_ref[...]                               # (1, TB) lane-dense


def _dqn_user_state_kernel(u_ref,
                           w1_ref, b1_ref, w2_ref, b2_ref, v1s_ref, c1_ref,
                           su_ref):
    """Pre-pass: SU = V1s @ state_net(U^T) + c1 for a tile of users (lanes)."""
    bf16 = jnp.bfloat16
    h = jnp.dot(w1_ref[...], u_ref[...], preferred_element_type=jnp.float32)
    h = jnp.maximum(h.astype(b1_ref.dtype) + b1_ref[...], 0.0)           # (64, TB)
    s = jnp.dot(w2_ref[...], h.astype(bf16), preferred_element_type=jnp.float32)
    s = jnp.maximum(s.astype(b2_ref.dtype) + b2_ref[...], 0.0)           # (32, TB)
    su = jnp.dot(v1s_ref[...], s.astype(bf16), preferred_element_type=jnp.float32)
    su_ref[...] = (su.astype(c1_ref.dtype) + c1_ref[...]).astype(su_ref.dtype)  # c1 folded in


def _dqn_cross_kernel(su_ref, mt_ref,
                      v1m_ref, v2_ref, c2_ref, v3_ref, c3_ref,
                      out_ref):
    """Score-all-movies: grid = (movie tile i OUTER, user j INNER).

    The movie tile is constant across the inner axis, so it is fetched from
    HBM once per outer step (catalog streamed exactly once).  The per-user
    vector SU (state_net + user half of value_net L1 + c1) is precomputed.
    """
    bf16 = jnp.bfloat16
    su = su_ref[0]                                                        # (64, 1)
    z = jnp.dot(v1m_ref[...], mt_ref[...], preferred_element_type=jnp.float32)  # (64, TM)
    z = jnp.maximum(z.astype(su.dtype) + su, 0.0)                         # single add: c1 folded
    z = jnp.dot(v2_ref[...], z.astype(bf16), preferred_element_type=jnp.float32)
    z = jnp.maximum(z.astype(c2_ref.dtype) + c2_ref[...], 0.0)            # (32, TM)
    q = jnp.dot(v3_ref[...], z.astype(bf16), preferred_element_type=jnp.float32)  # (8, TM)
    out_ref[0] = q[0:1, :] + c3_ref[...]                                  # (1, TM) lane-dense


# ----------------------------------------------------------------------------
# pallas_call wrappers
# ----------------------------------------------------------------------------

_PAIR_W_SHAPES = ((64, EMB), (64, 1), (32, 64), (32, 1),       # state_net
                  (64, 2 * EMB), (64, 1),                      # value_net L1 (merged)
                  (32, 64), (32, 1), (8, 32), (1, 1))          # value_net L2, L3 (padded)
_STATE_W_SHAPES = ((64, EMB), (64, 1), (32, 64), (32, 1), (64, 32), (64, 1))
_CROSS_W_SHAPES = ((64, EMB), (32, 64), (32, 1), (8, 32), (1, 1))


def _const_specs(shapes, n_grid_dims):
    zero = (lambda i: (0, 0)) if n_grid_dims == 1 else (lambda i, j: (0, 0))
    return [pl.BlockSpec(shape, zero) for shape in shapes]


def _pair_tile(B):
    bp128 = _round_up(B, 128)
    if bp128 >= 256:
        tb = min(_PAIR_TILE, max(128, (bp128 // 2) // 128 * 128))  # >=2 parallel steps
    else:
        tb = 128
    return tb, _round_up(B, tb)


def _q_pairwise(user_embeds, movie_embeds, params):
    """Q for matched (user, movie) pairs.  Returns (B, 1) float32."""
    B = user_embeds.shape[0]
    tb, Bp = _pair_tile(B)
    # TODO(synk): for very large B, gather straight into a padded transposed
    # buffer (or transpose in-kernel on the idle XLU) to skip this glue pass.
    u_t = jnp.pad(user_embeds.astype(jnp.bfloat16).T, ((0, 0), (0, Bp - B)))   # (32, Bp)
    m_t = jnp.pad(movie_embeds.astype(jnp.bfloat16).T, ((0, 0), (0, Bp - B)))  # (32, Bp)

    out = pl.pallas_call(
        _dqn_pair_kernel,
        out_shape=jax.ShapeDtypeStruct((1, Bp), jnp.float32),
        grid=(Bp // tb,),
        in_specs=[pl.BlockSpec((EMB, tb), lambda i: (0, i)),
                  pl.BlockSpec((EMB, tb), lambda i: (0, i))]
                 + _const_specs(_PAIR_W_SHAPES, 1),
        out_specs=pl.BlockSpec((1, tb), lambda i: (0, i)),
        compiler_params=pltpu.CompilerParams(dimension_semantics=("parallel",)),
    )(u_t, m_t,
      params["w1"], params["b1"], params["w2"], params["b2"],
      params["v1"], params["c1"], params["v2"], params["c2"],
      params["v3"], params["c3"])
    return out[0, :B].reshape(B, 1)


def _user_state_batch(user_embeds, params):
    """SU = V1s @ state_net(U^T) + c1 for all users.  Returns (64, B)."""
    B = user_embeds.shape[0]
    tb, Bp = _pair_tile(B)
    u_t = jnp.pad(user_embeds.astype(jnp.bfloat16).T, ((0, 0), (0, Bp - B)))   # (32, Bp)
    act_dtype = params["c1"].dtype

    su = pl.pallas_call(
        _dqn_user_state_kernel,
        out_shape=jax.ShapeDtypeStruct((64, Bp), act_dtype),
        grid=(Bp // tb,),
        in_specs=[pl.BlockSpec((EMB, tb), lambda i: (0, i))]
                 + _const_specs(_STATE_W_SHAPES, 1),
        out_specs=pl.BlockSpec((64, tb), lambda i: (0, i)),
        compiler_params=pltpu.CompilerParams(dimension_semantics=("parallel",)),
    )(u_t, params["w1"], params["b1"], params["w2"], params["b2"],
      params["v1s"], params["c1"])
    return su[:, :B]                                                      # (64, B)


def _q_all_movies(user_embeds, params):
    """Q of every movie for every user.  Returns (B, n_movies) float32."""
    B = user_embeds.shape[0]
    n_mov = params["movie_embed"].shape[0]
    m_t = params["movie_embed_t"]               # (EMB, Mp) bf16, pre-transposed/padded at init
    Mp = m_t.shape[1]
    tm = min(_MOVIE_TILE, Mp)                   # Mp is a multiple of tm by construction

    # Hoisted per-user pre-pass (removes the 1-lane MXU work + order-dependent
    # scratch from the streaming kernel).
    su = _user_state_batch(user_embeds, params)                           # (64, B)
    su3 = su.T.reshape(B, 64, 1)                                          # tiny glue relayout

    out = pl.pallas_call(
        _dqn_cross_kernel,
        out_shape=jax.ShapeDtypeStruct((B, 1, Mp), jnp.float32),
        grid=(Mp // tm, B),                     # movies OUTER, users INNER
        in_specs=[pl.BlockSpec((1, 64, 1), lambda i, j: (j, 0, 0)),   # per-user SU column
                  pl.BlockSpec((EMB, tm), lambda i, j: (0, i))]       # movie tile (const over j)
                 + _const_specs(_CROSS_W_SHAPES, 2),
        out_specs=pl.BlockSpec((1, 1, tm), lambda i, j: (j, 0, i)),
        compiler_params=pltpu.CompilerParams(
            dimension_semantics=("parallel", "arbitrary")),
    )(su3, m_t,
      params["v1m"], params["v2"], params["c2"], params["v3"], params["c3"])
    return out.reshape(B, Mp)[:, :n_mov]


# ----------------------------------------------------------------------------
# Model forward + params
# ----------------------------------------------------------------------------

def dqn_forward(params, users, movies=None):
    """Mirrors DQNRecSysModel.forward."""
    user_embeds = params["user_embed"][users]                 # (Bu, 32) gather (glue)
    if movies is not None:
        movie_embeds = params["movie_embed"][movies]          # (Bm, 32)
        Bu, Bm = user_embeds.shape[0], movie_embeds.shape[0]
        if Bu != Bm:
            if Bu == 1 and Bm > 1:
                user_embeds = jnp.broadcast_to(user_embeds, (Bm, EMB))
            elif Bm == 1 and Bu > 1:
                movie_embeds = jnp.broadcast_to(movie_embeds, (Bu, EMB))
            else:
                raise ValueError(
                    f"Incompatible batch sizes: users {Bu}, movies {Bm}")
        return _q_pairwise(user_embeds, movie_embeds, params)    # (B, 1)
    else:
        return _q_all_movies(user_embeds, params)                # (B, n_movies)


def init_params(key, n_users, n_movies, embedding_dim=EMB, act_dtype=None):
    if act_dtype is None:
        act_dtype = _default_act_dtype()       # bf16 elementwise on v6e/v7x, f32 otherwise
    keys = jax.random.split(key, 12)

    def linear(kw, kb, fan_in, fan_out, b_dtype):
        # PyTorch nn.Linear layout (out, in) and U(-1/sqrt(fan_in), +...) init.
        bound = float(1.0 / (fan_in ** 0.5))
        w = jax.random.uniform(kw, (fan_out, fan_in), jnp.float32, -bound, bound)
        b = jax.random.uniform(kb, (fan_out, 1), jnp.float32, -bound, bound)
        return w.astype(jnp.bfloat16), b.astype(b_dtype)

    user_embed = jax.random.normal(keys[0], (n_users, embedding_dim)).astype(jnp.bfloat16)
    movie_embed = jax.random.normal(keys[1], (n_movies, embedding_dim)).astype(jnp.bfloat16)
    w1, b1 = linear(keys[2], keys[3], embedding_dim, 64, act_dtype)
    w2, b2 = linear(keys[4], keys[5], 64, 32, act_dtype)
    v1, c1 = linear(keys[6], keys[7], 32 + embedding_dim, 64, act_dtype)
    v2, c2 = linear(keys[8], keys[9], 64, 32, act_dtype)
    v3, c3 = linear(keys[10], keys[11], 32, 1, jnp.float32)   # c3 stays f32 (output add)
    v3 = jnp.pad(v3, ((0, 7), (0, 0)))         # pad out-dim 1 -> 8 sublanes (rows 1..7 zero)

    # Pre-transposed + padded movie table for the score-all-movies path
    # (done once here instead of per call).
    mp128 = _round_up(n_movies, 128)
    tm = min(_MOVIE_TILE, mp128)
    Mp = _round_up(n_movies, tm)
    movie_embed_t = jnp.pad(movie_embed.T, ((0, 0), (0, Mp - n_movies)))  # (32, Mp) bf16

    return dict(user_embed=user_embed, movie_embed=movie_embed,
                movie_embed_t=movie_embed_t,
                w1=w1, b1=b1, w2=w2, b2=b2,
                v1=v1, v1s=v1[:, :32], v1m=v1[:, 32:], c1=c1,  # merged + split views of L1
                v2=v2, c2=c2, v3=v3, c3=c3)


# ----------------------------------------------------------------------------
# Pure-JAX reference (f32 math on the same bf16-stored params)
# ----------------------------------------------------------------------------

def _reference_forward(params, users, movies=None):
    f = lambda a: jnp.asarray(a, jnp.float32)
    w1, b1 = f(params["w1"]), f(params["b1"])[:, 0]
    w2, b2 = f(params["w2"]), f(params["b2"])[:, 0]
    v1, c1 = f(params["v1"]), f(params["c1"])[:, 0]
    v2, c2 = f(params["v2"]), f(params["c2"])[:, 0]
    v3, c3 = f(params["v3"])[:1], f(params["c3"])[:, 0]

    def state_net(x):
        h = jnp.maximum(x @ w1.T + b1, 0.0)
        return jnp.maximum(h @ w2.T + b2, 0.0)

    def value_net(x):
        z = jnp.maximum(x @ v1.T + c1, 0.0)
        z = jnp.maximum(z @ v2.T + c2, 0.0)
        return z @ v3.T + c3

    ue = f(params["user_embed"])[users]
    s = state_net(ue)
    if movies is not None:
        me = f(params["movie_embed"])[movies]
        if ue.shape[0] != me.shape[0]:
            if ue.shape[0] == 1:
                s = jnp.broadcast_to(s, (me.shape[0], s.shape[1]))
            else:
                me = jnp.broadcast_to(me, (ue.shape[0], me.shape[1]))
        return value_net(jnp.concatenate([s, me], axis=1))
    me = f(params["movie_embed"])
    B, M = s.shape[0], me.shape[0]
    comb = jnp.concatenate([
        jnp.broadcast_to(s[:, None, :], (B, M, s.shape[1])).reshape(B * M, -1),
        jnp.broadcast_to(me[None, :, :], (B, M, me.shape[1])).reshape(B * M, -1)], axis=1)
    return value_net(comb).reshape(B, M)


if __name__ == "__main__":
    key = jax.random.PRNGKey(0)
    n_users, n_movies = 16, 50
    params = init_params(key, n_users, n_movies, EMB)

    users = jnp.array([1, 3], dtype=jnp.int32)     # batch = 2
    movies = jnp.array([5, 7], dtype=jnp.int32)

    # Branch 1: (users, movies) -> per-pair Q-value, shape (2, 1)
    q_pair = dqn_forward(params, users, movies)
    # Branch 2: users only -> Q-values for every movie, shape (2, n_movies)
    q_all = dqn_forward(params, users, None)
    jax.block_until_ready((q_pair, q_all))

    assert q_pair.shape == (2, 1)
    assert q_all.shape == (2, n_movies)
    assert bool(jnp.all(jnp.isfinite(q_pair))) and bool(jnp.all(jnp.isfinite(q_all)))

    ref_pair = _reference_forward(params, users, movies)
    ref_all = _reference_forward(params, users, None)
    assert bool(jnp.allclose(q_pair, ref_pair, rtol=5e-2, atol=5e-2))
    assert bool(jnp.allclose(q_all, ref_all, rtol=5e-2, atol=5e-2))
    print("KERNEL_OK")
</pallas_src>

<mosaic_0001>
module attributes {stable_mosaic.version = 11 : i64} {
  func.func @_dqn_pair_kernel(%arg0: i32, %arg1: memref<32x128xbf16, #tpu.memory_space<vmem>>, %arg2: memref<32x128xbf16, #tpu.memory_space<vmem>>, %arg3: memref<64x32xbf16, #tpu.memory_space<vmem>>, %arg4: memref<64x1xf32, #tpu.memory_space<vmem>>, %arg5: memref<32x64xbf16, #tpu.memory_space<vmem>>, %arg6: memref<32x1xf32, #tpu.memory_space<vmem>>, %arg7: memref<64x64xbf16, #tpu.memory_space<vmem>>, %arg8: memref<64x1xf32, #tpu.memory_space<vmem>>, %arg9: memref<32x64xbf16, #tpu.memory_space<vmem>>, %arg10: memref<32x1xf32, #tpu.memory_space<vmem>>, %arg11: memref<8x32xbf16, #tpu.memory_space<vmem>>, %arg12: memref<1x1xf32, #tpu.memory_space<vmem>>, %arg13: memref<1x128xf32, #tpu.memory_space<vmem>>) attributes {dimension_semantics = [#tpu.dimension_semantics<parallel>], iteration_bounds = array<i64: 1>, scalar_prefetch = 0 : i64, scratch_operands = 0 : i64, tpu.core_type = #tpu.core_type<tc>, window_params = [{transform_indices = @transform_0, window_bounds = array<i64: 32, 128>}, {transform_indices = @transform_1, window_bounds = array<i64: 32, 128>}, {pipeline_mode = #tpu.pipeline_mode<synchronous>, transform_indices = @transform_2, window_bounds = array<i64: 64, 32>}, {pipeline_mode = #tpu.pipeline_mode<synchronous>, transform_indices = @transform_3, window_bounds = array<i64: 64, 1>}, {pipeline_mode = #tpu.pipeline_mode<synchronous>, transform_indices = @transform_4, window_bounds = array<i64: 32, 64>}, {pipeline_mode = #tpu.pipeline_mode<synchronous>, transform_indices = @transform_5, window_bounds = array<i64: 32, 1>}, {pipeline_mode = #tpu.pipeline_mode<synchronous>, transform_indices = @transform_6, window_bounds = array<i64: 64, 64>}, {pipeline_mode = #tpu.pipeline_mode<synchronous>, transform_indices = @transform_7, window_bounds = array<i64: 64, 1>}, {pipeline_mode = #tpu.pipeline_mode<synchronous>, transform_indices = @transform_8, window_bounds = array<i64: 32, 64>}, {pipeline_mode = #tpu.pipeline_mode<synchronous>, transform_indices = @transform_9, window_bounds = array<i64: 32, 1>}, {pipeline_mode = #tpu.pipeline_mode<synchronous>, transform_indices = @transform_10, window_bounds = array<i64: 8, 32>}, {pipeline_mode = #tpu.pipeline_mode<synchronous>, transform_indices = @transform_11, window_bounds = array<i64: 1, 1>}, {transform_indices = @transform_12, window_bounds = array<i64: 1, 128>}]} {
    %c0 = arith.constant 0 : index
    %c0_0 = arith.constant 0 : index
    %0 = vector.load %arg3[%c0, %c0_0] : memref<64x32xbf16, #tpu.memory_space<vmem>>, vector<64x32xbf16>
    %c0_1 = arith.constant 0 : index
    %c0_2 = arith.constant 0 : index
    %1 = vector.load %arg1[%c0_1, %c0_2] : memref<32x128xbf16, #tpu.memory_space<vmem>>, vector<32x128xbf16>
    %cst = arith.constant dense<0.000000e+00> : vector<64x128xf32>
    %2 = tpu.matmul %0, %1, %cst {dimension_numbers = #tpu.dot_dimension_numbers<[1], [0], [0], [1], [0, 0, 1, 1], [], []>} : vector<64x32xbf16>, vector<32x128xbf16>, vector<64x128xf32> -> vector<64x128xf32>
    %c0_3 = arith.constant 0 : index
    %c0_4 = arith.constant 0 : index
    %3 = vector.load %arg4[%c0_3, %c0_4] : memref<64x1xf32, #tpu.memory_space<vmem>>, vector<64x1xf32>
    %4 = vector.broadcast %3 : vector<64x1xf32> to vector<64x128xf32>
    %5 = arith.addf %2, %4 : vector<64x128xf32>
    %cst_5 = arith.constant 0.000000e+00 : f32
    %6 = vector.broadcast %cst_5 : f32 to vector<64x128xf32>
    %7 = arith.maximumf %5, %6 : vector<64x128xf32>
    %c0_6 = arith.constant 0 : index
    %c0_7 = arith.constant 0 : index
    %8 = vector.load %arg5[%c0_6, %c0_7] : memref<32x64xbf16, #tpu.memory_space<vmem>>, vector<32x64xbf16>
    %9 = arith.truncf %7 : vector<64x128xf32> to vector<64x128xbf16>
    %cst_8 = arith.constant dense<0.000000e+00> : vector<32x128xf32>
    %10 = tpu.matmul %8, %9, %cst_8 {dimension_numbers = #tpu.dot_dimension_numbers<[1], [0], [0], [1], [0, 0, 1, 1], [], []>} : vector<32x64xbf16>, vector<64x128xbf16>, vector<32x128xf32> -> vector<32x128xf32>
    %c0_9 = arith.constant 0 : index
    %c0_10 = arith.constant 0 : index
    %11 = vector.load %arg6[%c0_9, %c0_10] : memref<32x1xf32, #tpu.memory_space<vmem>>, vector<32x1xf32>
    %12 = vector.broadcast %11 : vector<32x1xf32> to vector<32x128xf32>
    %13 = arith.addf %10, %12 : vector<32x128xf32>
    %cst_11 = arith.constant 0.000000e+00 : f32
    %14 = vector.broadcast %cst_11 : f32 to vector<32x128xf32>
    %15 = arith.maximumf %13, %14 : vector<32x128xf32>
    %16 = arith.truncf %15 : vector<32x128xf32> to vector<32x128xbf16>
    %c0_12 = arith.constant 0 : index
    %c0_13 = arith.constant 0 : index
    %17 = vector.load %arg2[%c0_12, %c0_13] : memref<32x128xbf16, #tpu.memory_space<vmem>>, vector<32x128xbf16>
    %18 = tpu.concatenate %16, %17 in 0 : vector<32x128xbf16>, vector<32x128xbf16> -> vector<64x128xbf16>
    %c0_14 = arith.constant 0 : index
    %c0_15 = arith.constant 0 : index
    %19 = vector.load %arg7[%c0_14, %c0_15] : memref<64x64xbf16, #tpu.memory_space<vmem>>, vector<64x64xbf16>
    %cst_16 = arith.constant dense<0.000000e+00> : vector<64x128xf32>
    %20 = tpu.matmul %19, %18, %cst_16 {dimension_numbers = #tpu.dot_dimension_numbers<[1], [0], [0], [1], [0, 0, 1, 1], [], []>} : vector<64x64xbf16>, vector<64x128xbf16>, vector<64x128xf32> -> vector<64x128xf32>
    %c0_17 = arith.constant 0 : index
    %c0_18 = arith.constant 0 : index
    %21 = vector.load %arg8[%c0_17, %c0_18] : memref<64x1xf32, #tpu.memory_space<vmem>>, vector<64x1xf32>
    %22 = vector.broadcast %21 : vector<64x1xf32> to vector<64x128xf32>
    %23 = arith.addf %20, %22 : vector<64x128xf32>
    %cst_19 = arith.constant 0.000000e+00 : f32
    %24 = vector.broadcast %cst_19 : f32 to vector<64x128xf32>
    %25 = arith.maximumf %23, %24 : vector<64x128xf32>
    %c0_20 = arith.constant 0 : index
    %c0_21 = arith.constant 0 : index
    %26 = vector.load %arg9[%c0_20, %c0_21] : memref<32x64xbf16, #tpu.memory_space<vmem>>, vector<32x64xbf16>
    %27 = arith.truncf %25 : vector<64x128xf32> to vector<64x128xbf16>
    %cst_22 = arith.constant dense<0.000000e+00> : vector<32x128xf32>
    %28 = tpu.matmul %26, %27, %cst_22 {dimension_numbers = #tpu.dot_dimension_numbers<[1], [0], [0], [1], [0, 0, 1, 1], [], []>} : vector<32x64xbf16>, vector<64x128xbf16>, vector<32x128xf32> -> vector<32x128xf32>
    %c0_23 = arith.constant 0 : index
    %c0_24 = arith.constant 0 : index
    %29 = vector.load %arg10[%c0_23, %c0_24] : memref<32x1xf32, #tpu.memory_space<vmem>>, vector<32x1xf32>
    %30 = vector.broadcast %29 : vector<32x1xf32> to vector<32x128xf32>
    %31 = arith.addf %28, %30 : vector<32x128xf32>
    %cst_25 = arith.constant 0.000000e+00 : f32
    %32 = vector.broadcast %cst_25 : f32 to vector<32x128xf32>
    %33 = arith.maximumf %31, %32 : vector<32x128xf32>
    %c0_26 = arith.constant 0 : index
    %c0_27 = arith.constant 0 : index
    %34 = vector.load %arg11[%c0_26, %c0_27] : memref<8x32xbf16, #tpu.memory_space<vmem>>, vector<8x32xbf16>
    %35 = arith.truncf %33 : vector<32x128xf32> to vector<32x128xbf16>
    %cst_28 = arith.constant dense<0.000000e+00> : vector<8x128xf32>
    %36 = tpu.matmul %34, %35, %cst_28 {dimension_numbers = #tpu.dot_dimension_numbers<[1], [0], [0], [1], [0, 0, 1, 1], [], []>} : vector<8x32xbf16>, vector<32x128xbf16>, vector<8x128xf32> -> vector<8x128xf32>
    %37 = vector.extract_strided_slice %36 {offsets = [0, 0], sizes = [1, 128], strides = [1, 1]} : vector<8x128xf32> to vector<1x128xf32>
    %c0_29 = arith.constant 0 : index
    %c0_30 = arith.constant 0 : index
    %38 = vector.load %arg12[%c0_29, %c0_30] : memref<1x1xf32, #tpu.memory_space<vmem>>, vector<1x1xf32>
    %39 = vector.broadcast %38 : vector<1x1xf32> to vector<1x128xf32>
    %40 = arith.addf %37, %39 : vector<1x128xf32>
    %c0_31 = arith.constant 0 : index
    %c0_32 = arith.constant 0 : index
    %41 = vector.load %arg13[%c0_31, %c0_32] : memref<1x128xf32, #tpu.memory_space<vmem>>, vector<1x128xf32>
    tpu.vector_store %arg13[%c0_31, %c0_32], %40 {strides = array<i32>} : memref<1x128xf32, #tpu.memory_space<vmem>>, vector<1x128xf32>,
    return
  }
  func.func @transform_0(%arg0: i32) -> (i32, i32) {
    %c0_i32 = arith.constant 0 : i32
    %c0_i32_0 = arith.constant 0 : i32
    return %c0_i32, %arg0 : i32, i32
  }
  func.func @transform_1(%arg0: i32) -> (i32, i32) {
    %c0_i32 = arith.constant 0 : i32
    %c0_i32_0 = arith.constant 0 : i32
    return %c0_i32, %arg0 : i32, i32
  }
  func.func @transform_2(%arg0: i32) -> (i32, i32) {
    %c0_i32 = arith.constant 0 : i32
    %c0_i32_0 = arith.constant 0 : i32
    %c0_i32_1 = arith.constant 0 : i32
    return %c0_i32, %c0_i32_0 : i32, i32
  }
  func.func @transform_3(%arg0: i32) -> (i32, i32) {
    %c0_i32 = arith.constant 0 : i32
    %c0_i32_0 = arith.constant 0 : i32
    %c0_i32_1 = arith.constant 0 : i32
    return %c0_i32, %c0_i32_0 : i32, i32
  }
  func.func @transform_4(%arg0: i32) -> (i32, i32) {
    %c0_i32 = arith.constant 0 : i32
    %c0_i32_0 = arith.constant 0 : i32
    %c0_i32_1 = arith.constant 0 : i32
    return %c0_i32, %c0_i32_0 : i32, i32
  }
  func.func @transform_5(%arg0: i32) -> (i32, i32) {
    %c0_i32 = arith.constant 0 : i32
    %c0_i32_0 = arith.constant 0 : i32
    %c0_i32_1 = arith.constant 0 : i32
    return %c0_i32, %c0_i32_0 : i32, i32
  }
  func.func @transform_6(%arg0: i32) -> (i32, i32) {
    %c0_i32 = arith.constant 0 : i32
    %c0_i32_0 = arith.constant 0 : i32
    %c0_i32_1 = arith.constant 0 : i32
    return %c0_i32, %c0_i32_0 : i32, i32
  }
  func.func @transform_7(%arg0: i32) -> (i32, i32) {
    %c0_i32 = arith.constant 0 : i32
    %c0_i32_0 = arith.constant 0 : i32
    %c0_i32_1 = arith.constant 0 : i32
    return %c0_i32, %c0_i32_0 : i32, i32
  }
  func.func @transform_8(%arg0: i32) -> (i32, i32) {
    %c0_i32 = arith.constant 0 : i32
    %c0_i32_0 = arith.constant 0 : i32
    %c0_i32_1 = arith.constant 0 : i32
    return %c0_i32, %c0_i32_0 : i32, i32
  }
  func.func @transform_9(%arg0: i32) -> (i32, i32) {
    %c0_i32 = arith.constant 0 : i32
    %c0_i32_0 = arith.constant 0 : i32
    %c0_i32_1 = arith.constant 0 : i32
    return %c0_i32, %c0_i32_0 : i32, i32
  }
  func.func @transform_10(%arg0: i32) -> (i32, i32) {
    %c0_i32 = arith.constant 0 : i32
    %c0_i32_0 = arith.constant 0 : i32
    %c0_i32_1 = arith.constant 0 : i32
    return %c0_i32, %c0_i32_0 : i32, i32
  }
  func.func @transform_11(%arg0: i32) -> (i32, i32) {
    %c0_i32 = arith.constant 0 : i32
    %c0_i32_0 = arith.constant 0 : i32
    %c0_i32_1 = arith.constant 0 : i32
    return %c0_i32, %c0_i32_0 : i32, i32
  }
  func.func @transform_12(%arg0: i32) -> (i32, i32) {
    %c0_i32 = arith.constant 0 : i32
    %c0_i32_0 = arith.constant 0 : i32
    return %c0_i32, %arg0 : i32, i32
  }
}

</mosaic_0001>

<bundles_post_ra>
// kernel: tpu_custom_call.1
= control target key start
LH: loop header
LB: loop body
LE: loop exit
PB: predicated region body
PF: predicated region fallthrough
CT: control target
= control target key end

     0   :  { %s864_s0 = inlined_call_operand.vmem [shape: bf16[32,128], index: 0, kind: input, shape index: {}]   ;;  %s865_s1 = inlined_call_operand.vmem [shape: bf16[32,128], index: 1, kind: input, shape index: {}]   ;;  %s866_s2 = inlined_call_operand.vmem [shape: bf16[64,32], index: 2, kind: input, shape index: {}]   ;;  %s867_s3 = inlined_call_operand.vmem [shape: f32[64,1], index: 3, kind: input, shape index: {}]   ;;  %s868_s4 = inlined_call_operand.vmem [shape: bf16[32,64], index: 4, kind: input, shape index: {}]   ;;  %s869_s5 = inlined_call_operand.vmem [shape: f32[32,1], index: 5, kind: input, shape index: {}]   ;;  %s870_s6 = inlined_call_operand.vmem [shape: bf16[64,64], index: 6, kind: input, shape index: {}]   ;;  %s871_s7 = inlined_call_operand.vmem [shape: f32[64,1], index: 7, kind: input, shape index: {}]   ;;  %s872_s8 = inlined_call_operand.vmem [shape: bf16[32,64], index: 8, kind: input, shape index: {}]   ;;  %s873_s9 = inlined_call_operand.vmem [shape: f32[32,1], index: 9, kind: input, shape index: {}]   ;;  %s874_s10 = inlined_call_operand.vmem [shape: bf16[8,32], index: 10, kind: input, shape index: {}]   ;;  %s875_s11 = inlined_call_operand.<no memory space> [shape: f32[1,1], index: 11, kind: input, shape index: {}]   ;;  %s876_s12 = inlined_call_operand.hbm [shape: f32[1,128], index: 12, kind: output, shape index: {}]  }
   0x1   :  { %v17_v0 = vstv %s875_s11 }
   0x2   :  { %18 = vst [vmem:[#allocation2] sm:$0x1] %v17_v0 }
   0x3   :  { %v613_v1 = vld [vmem:[%s864_s0 + $0x8] sm:$0xff]  ;;  %v63_v2 = vld [vmem:[%s867_s3 + $0x30] sm:$0xff]  ;;  %v655_v3 = vmov 0   ;;  %v61_v4 = vld [vmem:[%s867_s3 + $0x20] sm:$0xff] }
   0x4   :  { %626 = vset.pattern.permute.xlu0 %v655_v3  ;;  %627 = vset.pattern.permute.xlu1 %v655_v3  ;;  %v612_v5 = vld [vmem:[%s864_s0] sm:$0xff] }
   0x5   :  { %156 = vmatpush.bf16.msra.mxu0 %v613_v1  ;;  %97 = vperm.xlu0 %626, %v63_v2  }
   0x6   :  { %87 = vperm.xlu1 %627, %v61_v4   ;;  %628 = vset.pattern.permute.xlu2 %v655_v3 }
   0x7   :  { %19 = vsyncpa [#allocation4], 0  ;;  %v608_v6 = vld [vmem:[%s866_s2] sm:$0xff]  ;;  %vm137_vm0 = vcmask 261120   ;;  %v64_v7 = vld [vmem:[%s867_s3 + $0x38] sm:$0xff]  ;;  %vm229_vm1 = vcmask 523264  }
   0x8   :  { %v62_v8 = vld [vmem:[%s867_s3 + $0x28] sm:$0xff]  ;;  %v59_v9 = vld [vmem:[%s867_s3 + $0x10] sm:$0xff]  ;;  %v57_v10 = vld [vmem:[%s867_s3] sm:$0xff]  ;;  %s656_s14 = smov [#allocation3]   ;;  %s522_s0 = sshll.u32 %s876_s12, 4  ;;  %s523_s0 = int_to_ptr.hbm [resolvable:$true] %s522_s0 }
   0x9   :  { %157 = vmatpush.bf16.msra.mxu0 %v612_v5  ;;  %77 = vperm.xlu2 %628, %v59_v9   ;;  %v60_v11 = vld [vmem:[%s867_s3 + $0x18] sm:$0xff]  ;;  %v58_v12 = vld [vmem:[%s867_s3 + $0x8] sm:$0xff]  ;;  %v195_v15 = vld [vmem:[%s869_s5] sm:$0xff]  ;;  %s520_s15 = sshll.u32 %s656_s14, 4  ;;  %s521_s15 = int_to_ptr.vmem [resolvable:$true] %s520_s15 }
   0xa   :  { %v609_v13 = vld [vmem:[%s866_s2 + $0x8] sm:$0xff]  ;;  %v198_v14 = vld [vmem:[%s869_s5 + $0x18] sm:$0xff]  ;;  %v197_v16 = vld [vmem:[%s869_s5 + $0x10] sm:$0xff] }
   0xb   :  { %v305_v17 = vld [vmem:[%s871_s7 + $0x30] sm:$0xff]  ;;  %v196_v18 = vld [vmem:[%s869_s5 + $0x8] sm:$0xff]  ;;  %v306_v19 = vld [vmem:[%s871_s7 + $0x38] sm:$0xff] }
   0xc   :  { %555 = vmatmul.msk.bf16.vlgmr.msra.gmra.mxu0 %vm137_vm0, %v608_v6  ;;  %v610_v20 = vld [vmem:[%s866_s2 + $0x10] sm:$0xff]  ;;  %v304_v21 = vld [vmem:[%s871_s7 + $0x28] sm:$0xff]  ;;  %v303_v22 = vld [vmem:[%s871_s7 + $0x20] sm:$0xff] }
   0xd   :  { %102 = vperm.xlu0 %626, %v64_v7   ;;  %v301_v23 = vld [vmem:[%s871_s7 + $0x10] sm:$0xff]  ;;  %v299_v24 = vld [vmem:[%s871_s7] sm:$0xff]  ;;  %v302_v25 = vld [vmem:[%s871_s7 + $0x18] sm:$0xff] }
   0xe   :  { %92 = vperm.xlu1 %627, %v62_v8   ;;  %v300_v26 = vld [vmem:[%s871_s7 + $0x8] sm:$0xff]  ;;  %v611_v27 = vld [vmem:[%s866_s2 + $0x18] sm:$0xff]  ;;  %v426_v29 = vld [vmem:[%s873_s9 + $0x10] sm:$0xff] }
   0xf   :  { %v427_v28 = vld [vmem:[%s873_s9 + $0x18] sm:$0xff]  ;;  %v424_v30 = vld [vmem:[%s873_s9] sm:$0xff]  ;;  %v425_v32 = vld [vmem:[%s873_s9 + $0x8] sm:$0xff] }
  0x10   :  { %v506_v31 = vld [vmem:[#allocation2] sm:$0x1]  ;;  %v615_v6 = vld [vmem:[%s868_s4 + $0x8] sm:$0xff] }
  0x11   :  { %82 = vperm.xlu2 %628, %v60_v11   ;;  %v614_v5 = vld [vmem:[%s868_s4] sm:$0xff]  ;;  %v617_v7 = vld [vmem:[%s865_s1 + $0x8] sm:$0xff] }
  0x12   :  { %383 = vmatpush.bf16.msra.mxu2 %v617_v7  ;;  %v616_v8 = vld [vmem:[%s865_s1] sm:$0xff] }
  0x15   :  { %67 = vperm.xlu0 %626, %v57_v10  }
  0x16   :  { %72 = vperm.xlu1 %627, %v58_v12   ;;  %384 = vmatpush.bf16.msra.mxu2 %v616_v8 }
  0x19   :  { %211 = vperm.xlu2 %628, %v197_v16  }
  0x1c   :  { %556 = vmatmul.msk.bf16.gmra.mxu0 %vm137_vm0, %v609_v13 }
  0x1d   :  { %216 = vperm.xlu0 %626, %v198_v14  }
  0x1e   :  { %201 = vperm.xlu1 %627, %v195_v15  }
  0x21   :  { %206 = vperm.xlu2 %628, %v196_v18  }
  0x25   :  { %339 = vperm.xlu0 %626, %v305_v17  }
  0x26   :  { %344 = vperm.xlu1 %627, %v306_v19  }
  0x29   :  { %329 = vperm.xlu2 %628, %v303_v22  }
  0x2c   :  { %557 = vmatmul.msk.bf16.gmra.mxu0 %vm137_vm0, %v610_v20 }
  0x2d   :  { %334 = vperm.xlu0 %626, %v304_v21  }
  0x2e   :  { %319 = vperm.xlu1 %627, %v301_v23  }
  0x31   :  { %324 = vperm.xlu2 %628, %v302_v25  }
  0x35   :  { %309 = vperm.xlu0 %626, %v299_v24  }
  0x36   :  { %314 = vperm.xlu1 %627, %v300_v26  }
  0x39   :  { %440 = vperm.xlu2 %628, %v426_v29  }
  0x3c   :  { %558 = vmatmul.msk.bf16.gmra.mxu0 %vm137_vm0, %v611_v27 }
  0x3d   :  { %445 = vperm.xlu0 %626, %v427_v28  }
  0x3e   :  { %430 = vperm.xlu1 %627, %v424_v30  }
  0x41   :  { %435 = vperm.xlu2 %628, %v425_v32  }
  0x45   :  { %509 = vperm.xlu0 %626, %v506_v31  }
  0x63   :  { %v78_v42 = vpop.permute.xlu2 %77 }
  0x6b   :  { %v83_v52 = vpop.permute.xlu2 %82 }
  0x73   :  { %v212_v11 = vpop.permute.xlu2 %211 }
  0x77   :  { %v98_v40 = vpop.permute.xlu0 %97 }
  0x78   :  { %v88_v39 = vpop.permute.xlu1 %87 }
  0x7b   :  { %v207_v14 = vpop.permute.xlu2 %206 }
  0x7f   :  { %v103_v44 = vpop.permute.xlu0 %102 }
  0x80   :  { %v93_v43 = vpop.permute.xlu1 %92 }
  0x87   :  { %v68_v59 = vpop.permute.xlu0 %67 }
  0x88   :  { %v73_v56 = vpop.permute.xlu1 %72 }
  0x89   :  { %v159_v33 = vpop.f32.mrf.mxu0 }
  0x8a   :  { %v160_v63 = vadd.f32 %v159_v33, %v68_v59 }
  0x8c   :  { %v179_v3 = vmax.f32 %v160_v63, 0.0 }
  0x8f   :  { %v217_v19 = vpop.permute.xlu0 %216 }
  0x90   :  { %v202_v16 = vpop.permute.xlu1 %201 }
  0x91   :  { %v161_v34 = vpop.f32.mrf.mxu0 }
  0x92   :  { %v162_v60 = vadd.f32 %v161_v34, %v73_v56 }
  0x94   :  { %v180_v1 = vmax.f32 %v162_v60, 0.0 }
  0x96   :  { %v191_v4 = vpack.c.bf16 %v180_v1, %v179_v3 }
  0x99   :  { %v164_v35 = vpop.f32.mrf.mxu0 }
  0x9a   :  { %v165_v57 = vadd.f32 %v164_v35, %v78_v42  ;;  %v618_v35 = vld [vmem:[%s870_s6] sm:$0xff] }
  0x9c   :  { %v181_v0 = vmax.f32 %v165_v57, 0.0 }
  0xa1   :  { %v166_v36 = vpop.f32.mrf.mxu0 }
  0xa2   :  { %v167_v53 = vadd.f32 %v166_v36, %v83_v52  ;;  %v619_v36 = vld [vmem:[%s870_s6 + $0x8] sm:$0xff] }
  0xa4   :  { %v182_v61 = vmax.f32 %v167_v53, 0.0 }
  0xa6   :  { %v192_v2 = vpack.c.bf16 %v182_v61, %v181_v0 }
  0xa9   :  { %v169_v37 = vpop.f32.mrf.mxu0 }
  0xaa   :  { %v170_v49 = vadd.f32 %v169_v37, %v88_v39  ;;  %v620_v37 = vld [vmem:[%s870_s6 + $0x10] sm:$0xff] }
  0xac   :  { %v183_v58 = vmax.f32 %v170_v49, 0.0 }
  0xb1   :  { %v171_v38 = vpop.f32.mrf.mxu0 }
  0xb2   :  { %v172_v47 = vadd.f32 %v171_v38, %v93_v43  ;;  %v621_v38 = vld [vmem:[%s870_s6 + $0x18] sm:$0xff] }
  0xb4   :  { %v184_v54 = vmax.f32 %v172_v47, 0.0 }
  0xb6   :  { %v193_v62 = vpack.c.bf16 %v184_v54, %v183_v58 }
  0xb9   :  { %v174_v41 = vpop.f32.mrf.mxu0 }
  0xba   :  { %v175_v45 = vadd.f32 %v174_v41, %v98_v40 }
  0xbc   :  { %v185_v50 = vmax.f32 %v175_v45, 0.0  ;;  %v345_v45 = vpop.permute.xlu1 %344 }
  0xc1   :  { %v176_v46 = vpop.f32.mrf.mxu0 }
  0xc2   :  { %v177_v48 = vadd.f32 %v176_v46, %v103_v44  ;;  %v340_v46 = vpop.permute.xlu0 %339 }
  0xc4   :  { %v186_v51 = vmax.f32 %v177_v48, 0.0  ;;  %v330_v48 = vpop.permute.xlu2 %329  ;;  %v320_v49 = vpop.permute.xlu1 %319 }
  0xc6   :  { %v194_v55 = vpack.c.bf16 %v186_v51, %v185_v50 }
  0xc8   :  { %240 = vmatpush.bf16.msra.mxu1 %v194_v55 }
  0xca   :  { %v335_v51 = vpop.permute.xlu0 %334 }
  0xcc   :  { %241 = vmatpush.bf16.msra.mxu1 %v193_v62  ;;  %v325_v58 = vpop.permute.xlu2 %324  ;;  %v315_v0 = vpop.permute.xlu1 %314 }
  0xd0   :  { %242 = vmatpush.bf16.msra.mxu1 %v192_v2 }
  0xd4   :  { %243 = vmatpush.bf16.msra.mxu1 %v191_v4  ;;  %v310_v4 = vpop.permute.xlu0 %309 }
  0xd7   :  { %567 = vmatmul.msk.bf16.vlgmr.msra.gmra.mxu1 %vm229_vm1, %v614_v5 }
  0xe7   :  { %568 = vmatmul.msk.bf16.gmra.mxu1 %vm229_vm1, %v615_v6 }
 0x154   :  { %v245_v9 = vpop.f32.mrf.mxu1 }
 0x155   :  { %v246_v17 = vadd.f32 %v245_v9, %v202_v16 }
 0x157   :  { %v255_v23 = vmax.f32 %v246_v17, 0.0 }
 0x159   :  { %v259_v28 = vpack.c.bf16 %v255_v23, %v255_v23  ;;  %v431_v23 = vpop.permute.xlu1 %430 }
 0x15b   :  { %v271_v33 = vunpack.c.l.b16 %v259_v28 }
 0x15c   :  { %v247_v10 = vpop.f32.mrf.mxu1 }
 0x15d   :  { %v248_v15 = vadd.f32 %v247_v10, %v207_v14 }
 0x15f   :  { %v256_v21 = vmax.f32 %v248_v15, 0.0  ;;  %v441_v15 = vpop.permute.xlu2 %440 }
 0x161   :  { %v260_v26 = vpack.c.bf16 %v256_v21, %v256_v21 }
 0x163   :  { %v272_v31 = vunpack.c.l.b16 %v260_v26 }
 0x164   :  { %v250_v12 = vpop.f32.mrf.mxu1 }
 0x165   :  { %v251_v13 = vadd.f32 %v250_v12, %v212_v11  ;;  %v275_v34 = vpack.c.b16 %v272_v31, %v271_v33  ;;  %v622_v11 = vld [vmem:[%s872_s8] sm:$0xff]  ;;  %v623_v12 = vld [vmem:[%s872_s8 + $0x8] sm:$0xff] }
 0x166   :  { %v487_v31 = vld [vmem:[%s874_s10] sm:$0xf] }
 0x167   :  { %v257_v18 = vmax.f32 %v251_v13, 0.0  ;;  %v436_v17 = vpop.permute.xlu2 %435 }
 0x169   :  { %v261_v24 = vpack.c.bf16 %v257_v18, %v257_v18 }
 0x16b   :  { %v273_v29 = vunpack.c.l.b16 %v261_v24 }
 0x16c   :  { %v252_v20 = vpop.f32.mrf.mxu1 }
 0x16d   :  { %v253_v22 = vadd.f32 %v252_v20, %v217_v19  ;;  %v446_v19 = vpop.permute.xlu0 %445 }
 0x16f   :  { %v258_v25 = vmax.f32 %v253_v22, 0.0 }
 0x171   :  { %v262_v27 = vpack.c.bf16 %v258_v25, %v258_v25 }
 0x173   :  { %v274_v30 = vunpack.c.l.b16 %v262_v27 }
 0x175   :  { %v276_v32 = vpack.c.b16 %v274_v30, %v273_v29 }
 0x177   :  { %385 = vmatpush.bf16.msra.mxu2 %v276_v32  ;;  %v510_v32 = vpop.permute.xlu0 %509 }
 0x178   :  { %v512_v33 = vperm.slane %v510_v32, 0 }
 0x17b   :  { %386 = vmatpush.bf16.msra.mxu2 %v275_v34 }
 0x17e   :  { %593 = vmatmul.msk.bf16.vlgmr.msra.gmra.mxu2 %vm229_vm1, %v618_v35 }
 0x18e   :  { %594 = vmatmul.msk.bf16.gmra.mxu2 %vm229_vm1, %v619_v36 }
 0x19e   :  { %595 = vmatmul.msk.bf16.gmra.mxu2 %vm229_vm1, %v620_v37 }
 0x1ae   :  { %596 = vmatmul.msk.bf16.gmra.mxu2 %vm229_vm1, %v621_v38 }
 0x201   :  { %v388_v39 = vpop.f32.mrf.mxu2 }
 0x202   :  { %v389_v5 = vadd.f32 %v388_v39, %v310_v4 }
 0x204   :  { %v408_v9 = vmax.f32 %v389_v5, 0.0 }
 0x209   :  { %v390_v40 = vpop.f32.mrf.mxu2 }
 0x20a   :  { %v391_v1 = vadd.f32 %v390_v40, %v315_v0 }
 0x20c   :  { %v409_v7 = vmax.f32 %v391_v1, 0.0 }
 0x20e   :  { %v420_v10 = vpack.c.bf16 %v409_v7, %v408_v9 }
 0x211   :  { %v393_v41 = vpop.f32.mrf.mxu2 }
 0x212   :  { %v394_v62 = vadd.f32 %v393_v41, %v320_v49 }
 0x214   :  { %v410_v6 = vmax.f32 %v394_v62, 0.0 }
 0x219   :  { %v395_v42 = vpop.f32.mrf.mxu2 }
 0x21a   :  { %v396_v59 = vadd.f32 %v395_v42, %v325_v58 }
 0x21c   :  { %v411_v2 = vmax.f32 %v396_v59, 0.0 }
 0x21e   :  { %v421_v8 = vpack.c.bf16 %v411_v2, %v410_v6 }
 0x221   :  { %v398_v43 = vpop.f32.mrf.mxu2 }
 0x222   :  { %v399_v55 = vadd.f32 %v398_v43, %v330_v48 }
 0x224   :  { %v412_v63 = vmax.f32 %v399_v55, 0.0 }
 0x229   :  { %v400_v44 = vpop.f32.mrf.mxu2 }
 0x22a   :  { %v401_v53 = vadd.f32 %v400_v44, %v335_v51 }
 0x22c   :  { %v413_v60 = vmax.f32 %v401_v53, 0.0 }
 0x22e   :  { %v422_v3 = vpack.c.bf16 %v413_v60, %v412_v63 }
 0x231   :  { %v403_v47 = vpop.f32.mrf.mxu2 }
 0x232   :  { %v404_v50 = vadd.f32 %v403_v47, %v340_v46 }
 0x234   :  { %v414_v56 = vmax.f32 %v404_v50, 0.0 }
 0x239   :  { %v405_v52 = vpop.f32.mrf.mxu2 }
 0x23a   :  { %v406_v54 = vadd.f32 %v405_v52, %v345_v45 }
 0x23c   :  { %v415_v57 = vmax.f32 %v406_v54, 0.0 }
 0x23e   :  { %v423_v61 = vpack.c.bf16 %v415_v57, %v414_v56 }
 0x240   :  { %468 = vmatpush.bf16.msra.mxu3 %v423_v61 }
 0x244   :  { %469 = vmatpush.bf16.msra.mxu3 %v422_v3 }
 0x248   :  { %470 = vmatpush.bf16.msra.mxu3 %v421_v8 }
 0x24c   :  { %471 = vmatpush.bf16.msra.mxu3 %v420_v10 }
 0x24f   :  { %605 = vmatmul.msk.bf16.vlgmr.msra.gmra.mxu3 %vm229_vm1, %v622_v11 }
 0x25f   :  { %606 = vmatmul.msk.bf16.gmra.mxu3 %vm229_vm1, %v623_v12 }
 0x2d2   :  { %v473_v13 = vpop.f32.mrf.mxu3 }
 0x2d3   :  { %v474_v24 = vadd.f32 %v473_v13, %v431_v23 }
 0x2d5   :  { %v483_v29 = vmax.f32 %v474_v24, 0.0 }
 0x2da   :  { %v475_v14 = vpop.f32.mrf.mxu3 }
 0x2db   :  { %v476_v21 = vadd.f32 %v475_v14, %v436_v17 }
 0x2dd   :  { %v484_v27 = vmax.f32 %v476_v21, 0.0 }
 0x2df   :  { %v488_v30 = vpack.c.bf16 %v484_v27, %v483_v29 }
 0x2e2   :  { %v478_v16 = vpop.f32.mrf.mxu3 }
 0x2e3   :  { %v479_v18 = vadd.f32 %v478_v16, %v441_v15 }
 0x2e5   :  { %v485_v25 = vmax.f32 %v479_v18, 0.0 }
 0x2ea   :  { %v480_v20 = vpop.f32.mrf.mxu3 }
 0x2eb   :  { %v481_v22 = vadd.f32 %v480_v20, %v446_v19 }
 0x2ed   :  { %v486_v26 = vmax.f32 %v481_v22, 0.0 }
 0x2ef   :  { %v489_v28 = vpack.c.bf16 %v486_v26, %v485_v25 }
 0x2f1   :  { %499 = vmatpush.bf16.msrb.mxu1 %v489_v28 }
 0x2f5   :  { %500 = vmatpush.bf16.msrb.mxu1 %v488_v30 }
 0x2f8   :  { %607 = vmatmul.msk.bf16.vlgmr.msrb.gmra.mxu1 %vm137_vm0, %v487_v31 }
 0x375   :  { %v502_v34 = vpop.f32.mrf.mxu1 }
 0x376   :  { %v513_v35 = vadd.f32 %v512_v33, %v502_v34 }
 0x378   :  { %514 = vst [vmem:[#allocation3] sm:$0x1] %v513_v35 }
 0x379   :  { %525 = dma.vmem_to_hbm [thread:$0]  %s521_s15, 16, %s523_s0, [#allocation4]  }
 0x37d   :  { %v504_v36 = vpop.f32.mrf.mxu1 }
 0x37e   :  { %653 = dma.done.wait [#allocation4], 16  }
 0x37f   :  { %654 = vsyncadd [#allocation4], 4294967280 }
 0x380   :  { %530 = vsyncpa [#allocation4], 1 }

</bundles_post_ra>
